<compile_context>
chip_gen: v7x
topology: tpu7x:2x2x1
jax: 0.10.0
libtpu: 0.0.40
codegen_flags: <defaults>
</compile_context>

<pallas_src>
import jax
import jax.numpy as jnp
from jax import lax
from jax.experimental import pallas as pl
from jax.experimental.pallas import tpu as pltpu

LANES = 128
ACC_ROWS = 512          # fixed accumulator: 512 x 128 f32 = 256 KiB VMEM


def _round_up(a: int, b: int) -> int:
    return ((a + b - 1) // b) * b


def _cdiv(a: int, b: int) -> int:
    return -(-a // b)


def _chip_config():
    """Return (max_tile_rows, num_splits) tuned per TPU generation."""
    try:
        kind = jax.devices()[0].device_kind.lower()
    except Exception:
        kind = ""
    is_v5e = ("v5 lite" in kind) or ("v5e" in kind) or ("v5litepod" in kind)
    # v7x exposes two TensorCores per chip -> shard the leading grid axis.
    two_tc = ("v7" in kind) or ("tpu7" in kind) or ("7x" in kind)
    # 8192 rows = 4 MiB f32 per input tile (16 MiB double-buffered for 2 inputs)
    # fits v6e/v7x scoped-VMEM defaults; cap at 4096 on v5e (16 MiB default).
    max_tile_rows = 4096 if is_v5e else 8192
    return max_tile_rows, (2 if two_tc else 1)


def _make_mse_kernel(tile_rows, tiles_per_split, rows_valid, sub_chunks):
    """Streaming sum((x-y)^2) with in-kernel masking of the ragged row tail."""

    def kernel(x_ref, y_ref, o_ref, acc_ref):
        c = pl.program_id(0)   # split axis ("parallel")
        i = pl.program_id(1)   # reduction axis ("arbitrary")

        # NOTE: this init/epilogue accumulator pattern is only correct while
        # the reduction axis (i) stays the INNERMOST grid axis.
        @pl.when(i == 0)
        def _init():
            acc_ref[...] = jnp.zeros_like(acc_ref)

        # Logical (unclamped) tile index -> global start row of this block.
        # The index_map clamps duplicate overhang blocks onto the last real
        # block; those blocks have start_row >= rows_valid and are fully
        # masked below, so they contribute exactly zero.
        start_row = (c * tiles_per_split + i) * tile_rows

        def _fold(k, masked):
            r0 = pl.multiple_of(k * ACC_ROWS, ACC_ROWS)
            xs = x_ref[pl.ds(r0, ACC_ROWS), :].astype(jnp.float32)
            ys = y_ref[pl.ds(r0, ACC_ROWS), :].astype(jnp.float32)
            d = xs - ys
            sq = d * d
            if masked:
                # Rows past rows_valid hold unspecified (garbage) data from the
                # partial edge block; select them away before accumulating.
                row = (start_row + r0) + lax.broadcasted_iota(
                    jnp.int32, (ACC_ROWS, LANES), 0)
                sq = jnp.where(row < rows_valid, sq, 0.0)
            acc_ref[...] += sq
            return 0

        # Hot path: fully valid tile, no masking work on the VPU.
        @pl.when(start_row + tile_rows <= rows_valid)
        def _hot():
            lax.fori_loop(0, sub_chunks, lambda k, _: _fold(k, False), 0,
                          unroll=True)

        # Tail path: tile crosses (or lies past) the valid-row boundary.
        @pl.when(start_row + tile_rows > rows_valid)
        def _tail():
            lax.fori_loop(0, sub_chunks, lambda k, _: _fold(k, True), 0,
                          unroll=True)

        @pl.when(i == pl.num_programs(1) - 1)
        def _fin():
            # Epilogue-only sublane reduce of the small accumulator down to a
            # single lane-dense (8, 128) vreg tile per split.
            p = acc_ref[0:8, :]
            for r0 in range(8, ACC_ROWS, 8):
                p = p + acc_ref[r0:r0 + 8, :]
            o_ref[...] = p

    return kernel


def mse_loss_pallas(recon: jax.Array, target: jax.Array, *,
                    max_tile_rows=None, num_splits=None) -> jax.Array:
    """mean((recon - target)^2) over all elements via a Pallas streaming kernel."""
    assert recon.shape == target.shape, (recon.shape, target.shape)
    if recon.dtype != target.dtype:
        ct = jnp.promote_types(recon.dtype, target.dtype)
        recon = recon.astype(ct)
        target = target.astype(ct)

    total_n = 1
    for s in recon.shape:
        total_n *= int(s)
    inv_n = 1.0 / float(total_n)   # hoisted; no in-kernel divide

    chip_max_rows, chip_splits = _chip_config()
    if max_tile_rows is None:
        max_tile_rows = chip_max_rows
    max_tile_rows = max(ACC_ROWS, (max_tile_rows // ACC_ROWS) * ACC_ROWS)

    x = recon.reshape(-1)
    y = target.reshape(-1)
    rem = total_n % LANES
    if rem:
        # TODO(synk): rare fallback (video tensors are ~always multiples of
        # 128 elements); this path materializes padded copies of the inputs.
        # Zero padding is exact for sum-of-squared-diffs; we divide by the
        # true element count below.
        pad = LANES - rem
        x = jnp.pad(x, (0, pad))
        y = jnp.pad(y, (0, pad))
    rows = (total_n + (LANES - rem if rem else 0)) // LANES
    x = x.reshape(rows, LANES)   # free bitcast reshape, native dtype, lane-dense
    y = y.reshape(rows, LANES)
    rows_valid = rows            # zero-padded tail (if any) contributes 0

    tile_rows = min(max_tile_rows, _round_up(rows, ACC_ROWS))
    sub_chunks = tile_rows // ACC_ROWS
    total_tiles = _cdiv(rows, tile_rows)

    if num_splits is None:
        num_splits = chip_splits
        if total_tiles < 4 * num_splits:   # not worth sharding tiny grids
            num_splits = 1
    num_splits = max(1, min(int(num_splits), total_tiles))
    tiles_per_split = _cdiv(total_tiles, num_splits)

    # Clamp so overhang blocks (when total_tiles % num_splits != 0) stay
    # in-bounds; the kernel masks them out via their logical start row.
    def in_map(c, i):
        return (jnp.minimum(c * tiles_per_split + i, total_tiles - 1), 0)

    kernel = _make_mse_kernel(tile_rows, tiles_per_split, rows_valid, sub_chunks)

    itemsize = x.dtype.itemsize
    tile_bytes = tile_rows * LANES * itemsize
    out_bytes = num_splits * 8 * LANES * 4
    vmem_need = 2 * 2 * tile_bytes + ACC_ROWS * LANES * 4 + 2 * out_bytes
    vmem_limit = min(vmem_need + (8 << 20), 48 << 20)

    cost = pl.CostEstimate(
        flops=3 * total_n, transcendentals=0,
        bytes_accessed=2 * rows * LANES * itemsize + out_bytes)

    partials = pl.pallas_call(
        kernel,
        out_shape=jax.ShapeDtypeStruct((num_splits * 8, LANES), jnp.float32),
        grid_spec=pltpu.PrefetchScalarGridSpec(
            num_scalar_prefetch=0,
            grid=(num_splits, tiles_per_split),
            in_specs=[
                pl.BlockSpec((tile_rows, LANES), in_map),
                pl.BlockSpec((tile_rows, LANES), in_map),
            ],
            out_specs=pl.BlockSpec((8, LANES), lambda c, i: (c, 0)),
            scratch_shapes=[pltpu.VMEM((ACC_ROWS, LANES), jnp.float32)],
        ),
        compiler_params=pltpu.CompilerParams(
            dimension_semantics=("parallel", "arbitrary"),
            vmem_limit_bytes=vmem_limit),
        cost_estimate=cost,
    )(x, y)

    # Tiny final combine of the (num_splits*8, 128) partials.
    return jnp.sum(partials) * inv_n


class ReconstructionLossPallas:
    """JAX/Pallas port of ReconstructionLoss (generator path).

    Matches the PyTorch module with use_disc=False and lpips_weight=0.0.
    """

    def __init__(self, lpips_weight: float = 0.0, use_disc: bool = False,
                 total_steps: int = 1000):
        self.lpips_weight = lpips_weight
        self.use_disc = use_disc
        self.total_steps = total_steps
        # TODO(synk): LPIPS perceptual network is an external module in PyTorch;
        # no in-script Pallas equivalent.
        # TODO(synk): ViTDiscriminator is not defined in the provided source, so
        # the GAN branch (softplus / adaptive weight / LeCAM) is not exercised.

    def __call__(self, target, recon, global_step, last_layer=None,
                 results_dict=None, disc_forward=False):
        if disc_forward:
            raise NotImplementedError(
                "discriminator forward requires ViTDiscriminator (not provided)")
        return self._forward_generator(target, recon, global_step)

    def _forward_generator(self, target, recon, global_step):
        loss_dict = {}
        # MSE over 'b c t h w -> (b t) c h w' with reduction='mean' is the
        # mean over all elements, so the rearrange is a no-op here.
        recon_loss = mse_loss_pallas(recon, target)
        loss_dict["recon_loss"] = recon_loss

        lpips_loss = 0.0  # lpips_weight == 0.0 -> branch skipped (as in torch)

        disc_factor = 0.0
        d_weight = 0.0
        g_loss = 0.0
        # use_disc == False -> GAN branch skipped (as in torch)

        total_loss = (recon_loss
                      + d_weight * disc_factor * g_loss
                      + self.lpips_weight * lpips_loss)
        loss_dict["total_loss"] = total_loss
        return total_loss, {"train/" + k: v for k, v in loss_dict.items()}


if __name__ == "__main__":
    key = jax.random.PRNGKey(0)
    ks = jax.random.split(key, 8)
    loss_mod = ReconstructionLossPallas(lpips_weight=0.0, use_disc=False)

    # 1) Module-level call: small video tensor b c t h w, f32 (pad-free path,
    #    single partial tile -> masked branch).
    B, C, T, H, W = 2, 3, 4, 16, 16
    target = jax.random.normal(ks[0], (B, C, T, H, W), dtype=jnp.float32)
    recon = jax.random.normal(ks[1], (B, C, T, H, W), dtype=jnp.float32)
    total_loss, loss_dict = loss_mod(target, recon, global_step=0)
    total_loss = jax.block_until_ready(total_loss)
    ref = jnp.mean((recon - target) ** 2)
    assert jnp.allclose(total_loss, ref, rtol=1e-5, atol=1e-6), (
        float(total_loss), float(ref))
    assert jnp.allclose(loss_dict["train/recon_loss"], ref, rtol=1e-5, atol=1e-6)

    # 2) Multi-tile case with forced small tiles + 2-way split: exercises the
    #    unmasked hot path, the in-kernel ragged-tail mask and the clamped
    #    duplicate overhang block.
    shape2 = (2, 3, 4, 80, 80)   # 153600 elements -> 1200 rows of 128 lanes
    t2 = jax.random.normal(ks[2], shape2, dtype=jnp.float32)
    r2 = jax.random.normal(ks[3], shape2, dtype=jnp.float32)
    l2 = jax.block_until_ready(
        mse_loss_pallas(r2, t2, max_tile_rows=512, num_splits=2))
    ref2 = jnp.mean((r2 - t2) ** 2)
    assert jnp.allclose(l2, ref2, rtol=1e-5, atol=1e-6), (float(l2), float(ref2))

    # 3) Awkward shape (element count not a multiple of 128) -> tiny-pad fallback.
    t3 = jax.random.normal(ks[4], (1, 3, 2, 15, 13), dtype=jnp.float32)
    r3 = jax.random.normal(ks[5], (1, 3, 2, 15, 13), dtype=jnp.float32)
    l3 = jax.block_until_ready(mse_loss_pallas(r3, t3))
    ref3 = jnp.mean((r3 - t3) ** 2)
    assert jnp.allclose(l3, ref3, rtol=1e-5, atol=1e-6), (float(l3), float(ref3))

    # 4) bf16 inputs streamed natively (upcast happens in-vreg).
    t4 = jax.random.normal(ks[6], (B, C, T, H, W), dtype=jnp.float32).astype(jnp.bfloat16)
    r4 = jax.random.normal(ks[7], (B, C, T, H, W), dtype=jnp.float32).astype(jnp.bfloat16)
    l4 = jax.block_until_ready(mse_loss_pallas(r4, t4))
    ref4 = jnp.mean((r4.astype(jnp.float32) - t4.astype(jnp.float32)) ** 2)
    assert jnp.allclose(l4, ref4, rtol=1e-4, atol=1e-5), (float(l4), float(ref4))

    print("KERNEL_OK")
</pallas_src>

<mosaic_0001>
module attributes {stable_mosaic.version = 11 : i64} {
  func.func @kernel(%arg0: i32, %arg1: i32, %arg2: memref<512x128xf32, #tpu.memory_space<vmem>>, %arg3: memref<512x128xf32, #tpu.memory_space<vmem>>, %arg4: memref<8x128xf32, #tpu.memory_space<vmem>>, %arg5: memref<512x128xf32, #tpu.memory_space<vmem>>) attributes {dimension_semantics = [#tpu.dimension_semantics<parallel>, #tpu.dimension_semantics<arbitrary>], iteration_bounds = array<i64: 1, 1>, scalar_prefetch = 0 : i64, scratch_operands = 1 : i64, tpu.core_type = #tpu.core_type<tc>, window_params = [{transform_indices = @transform_0, window_bounds = array<i64: 512, 128>}, {transform_indices = @transform_1, window_bounds = array<i64: 512, 128>}, {transform_indices = @transform_2, window_bounds = array<i64: 8, 128>}]} {
    %c0_i32 = arith.constant 0 : i32
    %0 = arith.cmpi eq, %arg1, %c0_i32 : i32
    %1 = arith.extui %0 : i1 to i32
    %c0_i32_0 = arith.constant 0 : i32
    %2 = arith.cmpi ne, %1, %c0_i32_0 : i32
    scf.if %2 {
      %cst = arith.constant 0.000000e+00 : f32
      %17 = vector.broadcast %cst : f32 to vector<512x128xf32>
      %c0 = arith.constant 0 : index
      %c0_8 = arith.constant 0 : index
      %18 = vector.load %arg5[%c0, %c0_8] : memref<512x128xf32, #tpu.memory_space<vmem>>, vector<512x128xf32>
      tpu.vector_store %arg5[%c0, %c0_8], %17 {strides = array<i32>} : memref<512x128xf32, #tpu.memory_space<vmem>>, vector<512x128xf32>,
    } else {
    }
    %c1_i32 = arith.constant 1 : i32
    %3 = arith.muli %arg0, %c1_i32 : i32
    %4 = arith.addi %3, %arg1 : i32
    %c512_i32 = arith.constant 512 : i32
    %5 = arith.muli %4, %c512_i32 : i32
    %c512_i32_1 = arith.constant 512 : i32
    %6 = arith.addi %5, %c512_i32_1 : i32
    %c48_i32 = arith.constant 48 : i32
    %7 = arith.cmpi sle, %6, %c48_i32 : i32
    %8 = arith.extui %7 : i1 to i32
    %c0_i32_2 = arith.constant 0 : i32
    %9 = arith.cmpi ne, %8, %c0_i32_2 : i32
    scf.if %9 {
      %c0_i32_8 = arith.constant 0 : i32
      %c512_i32_9 = arith.constant 512 : i32
      %17 = arith.muli %c0_i32_8, %c512_i32_9 : i32
      %18 = tpu.assume_multiple %17, 512 : i32
      %19 = arith.index_cast %18 : i32 to index
      %c0 = arith.constant 0 : index
      %20 = vector.load %arg2[%19, %c0] : memref<512x128xf32, #tpu.memory_space<vmem>>, vector<512x128xf32>
      %21 = arith.index_cast %18 : i32 to index
      %c0_10 = arith.constant 0 : index
      %22 = vector.load %arg3[%21, %c0_10] : memref<512x128xf32, #tpu.memory_space<vmem>>, vector<512x128xf32>
      %23 = arith.subf %20, %22 : vector<512x128xf32>
      %24 = arith.mulf %23, %23 : vector<512x128xf32>
      %c0_11 = arith.constant 0 : index
      %c0_12 = arith.constant 0 : index
      %25 = vector.load %arg5[%c0_11, %c0_12] : memref<512x128xf32, #tpu.memory_space<vmem>>, vector<512x128xf32>
      %26 = arith.addf %25, %24 : vector<512x128xf32>
      %c0_13 = arith.constant 0 : index
      %c0_14 = arith.constant 0 : index
      %27 = vector.load %arg5[%c0_13, %c0_14] : memref<512x128xf32, #tpu.memory_space<vmem>>, vector<512x128xf32>
      tpu.vector_store %arg5[%c0_13, %c0_14], %26 {strides = array<i32>} : memref<512x128xf32, #tpu.memory_space<vmem>>, vector<512x128xf32>,
      %c1_i32_15 = arith.constant 1 : i32
    } else {
    }
    %c512_i32_3 = arith.constant 512 : i32
    %10 = arith.addi %5, %c512_i32_3 : i32
    %c48_i32_4 = arith.constant 48 : i32
    %11 = arith.cmpi sgt, %10, %c48_i32_4 : i32
    %12 = arith.extui %11 : i1 to i32
    %c0_i32_5 = arith.constant 0 : i32
    %13 = arith.cmpi ne, %12, %c0_i32_5 : i32
    scf.if %13 {
      %c0_i32_8 = arith.constant 0 : i32
      %c512_i32_9 = arith.constant 512 : i32
      %17 = arith.muli %c0_i32_8, %c512_i32_9 : i32
      %18 = tpu.assume_multiple %17, 512 : i32
      %19 = arith.index_cast %18 : i32 to index
      %c0 = arith.constant 0 : index
      %20 = vector.load %arg2[%19, %c0] : memref<512x128xf32, #tpu.memory_space<vmem>>, vector<512x128xf32>
      %21 = arith.index_cast %18 : i32 to index
      %c0_10 = arith.constant 0 : index
      %22 = vector.load %arg3[%21, %c0_10] : memref<512x128xf32, #tpu.memory_space<vmem>>, vector<512x128xf32>
      %23 = arith.subf %20, %22 : vector<512x128xf32>
      %24 = arith.mulf %23, %23 : vector<512x128xf32>
      %25 = arith.addi %5, %18 : i32
      %26 = tpu.iota {dimensions = array<i32: 0>} : vector<512x128xi32>
      %27 = vector.broadcast %25 : i32 to vector<512x128xi32>
      %28 = arith.addi %27, %26 : vector<512x128xi32>
      %c48_i32_11 = arith.constant 48 : i32
      %29 = vector.broadcast %c48_i32_11 : i32 to vector<512x128xi32>
      %30 = arith.cmpi slt, %28, %29 : vector<512x128xi32>
      %cst = arith.constant 0.000000e+00 : f32
      %31 = vector.broadcast %cst : f32 to vector<512x128xf32>
      %32 = arith.select %30, %24, %31 : vector<512x128xi1>, vector<512x128xf32>
      %c0_12 = arith.constant 0 : index
      %c0_13 = arith.constant 0 : index
      %33 = vector.load %arg5[%c0_12, %c0_13] : memref<512x128xf32, #tpu.memory_space<vmem>>, vector<512x128xf32>
      %34 = arith.addf %33, %32 : vector<512x128xf32>
      %c0_14 = arith.constant 0 : index
      %c0_15 = arith.constant 0 : index
      %35 = vector.load %arg5[%c0_14, %c0_15] : memref<512x128xf32, #tpu.memory_space<vmem>>, vector<512x128xf32>
      tpu.vector_store %arg5[%c0_14, %c0_15], %34 {strides = array<i32>} : memref<512x128xf32, #tpu.memory_space<vmem>>, vector<512x128xf32>,
      %c1_i32_16 = arith.constant 1 : i32
    } else {
    }
    %c0_i32_6 = arith.constant 0 : i32
    %14 = arith.cmpi eq, %arg1, %c0_i32_6 : i32
    %15 = arith.extui %14 : i1 to i32
    %c0_i32_7 = arith.constant 0 : i32
    %16 = arith.cmpi ne, %15, %c0_i32_7 : i32
    scf.if %16 {
      %c0 = arith.constant 0 : index
      %c0_8 = arith.constant 0 : index
      %17 = vector.load %arg5[%c0, %c0_8] : memref<512x128xf32, #tpu.memory_space<vmem>>, vector<8x128xf32>
      %c8 = arith.constant 8 : index
      %c0_9 = arith.constant 0 : index
      %18 = vector.load %arg5[%c8, %c0_9] : memref<512x128xf32, #tpu.memory_space<vmem>>, vector<8x128xf32>
      %19 = arith.addf %17, %18 : vector<8x128xf32>
      %c16 = arith.constant 16 : index
      %c0_10 = arith.constant 0 : index
      %20 = vector.load %arg5[%c16, %c0_10] : memref<512x128xf32, #tpu.memory_space<vmem>>, vector<8x128xf32>
      %21 = arith.addf %19, %20 : vector<8x128xf32>
      %c24 = arith.constant 24 : index
      %c0_11 = arith.constant 0 : index
      %22 = vector.load %arg5[%c24, %c0_11] : memref<512x128xf32, #tpu.memory_space<vmem>>, vector<8x128xf32>
      %23 = arith.addf %21, %22 : vector<8x128xf32>
      %c32 = arith.constant 32 : index
      %c0_12 = arith.constant 0 : index
      %24 = vector.load %arg5[%c32, %c0_12] : memref<512x128xf32, #tpu.memory_space<vmem>>, vector<8x128xf32>
      %25 = arith.addf %23, %24 : vector<8x128xf32>
      %c40 = arith.constant 40 : index
      %c0_13 = arith.constant 0 : index
      %26 = vector.load %arg5[%c40, %c0_13] : memref<512x128xf32, #tpu.memory_space<vmem>>, vector<8x128xf32>
      %27 = arith.addf %25, %26 : vector<8x128xf32>
      %c48 = arith.constant 48 : index
      %c0_14 = arith.constant 0 : index
      %28 = vector.load %arg5[%c48, %c0_14] : memref<512x128xf32, #tpu.memory_space<vmem>>, vector<8x128xf32>
      %29 = arith.addf %27, %28 : vector<8x128xf32>
      %c56 = arith.constant 56 : index
      %c0_15 = arith.constant 0 : index
      %30 = vector.load %arg5[%c56, %c0_15] : memref<512x128xf32, #tpu.memory_space<vmem>>, vector<8x128xf32>
      %31 = arith.addf %29, %30 : vector<8x128xf32>
      %c64 = arith.constant 64 : index
      %c0_16 = arith.constant 0 : index
      %32 = vector.load %arg5[%c64, %c0_16] : memref<512x128xf32, #tpu.memory_space<vmem>>, vector<8x128xf32>
      %33 = arith.addf %31, %32 : vector<8x128xf32>
      %c72 = arith.constant 72 : index
      %c0_17 = arith.constant 0 : index
      %34 = vector.load %arg5[%c72, %c0_17] : memref<512x128xf32, #tpu.memory_space<vmem>>, vector<8x128xf32>
      %35 = arith.addf %33, %34 : vector<8x128xf32>
      %c80 = arith.constant 80 : index
      %c0_18 = arith.constant 0 : index
      %36 = vector.load %arg5[%c80, %c0_18] : memref<512x128xf32, #tpu.memory_space<vmem>>, vector<8x128xf32>
      %37 = arith.addf %35, %36 : vector<8x128xf32>
      %c88 = arith.constant 88 : index
      %c0_19 = arith.constant 0 : index
      %38 = vector.load %arg5[%c88, %c0_19] : memref<512x128xf32, #tpu.memory_space<vmem>>, vector<8x128xf32>
      %39 = arith.addf %37, %38 : vector<8x128xf32>
      %c96 = arith.constant 96 : index
      %c0_20 = arith.constant 0 : index
      %40 = vector.load %arg5[%c96, %c0_20] : memref<512x128xf32, #tpu.memory_space<vmem>>, vector<8x128xf32>
      %41 = arith.addf %39, %40 : vector<8x128xf32>
      %c104 = arith.constant 104 : index
      %c0_21 = arith.constant 0 : index
      %42 = vector.load %arg5[%c104, %c0_21] : memref<512x128xf32, #tpu.memory_space<vmem>>, vector<8x128xf32>
      %43 = arith.addf %41, %42 : vector<8x128xf32>
      %c112 = arith.constant 112 : index
      %c0_22 = arith.constant 0 : index
      %44 = vector.load %arg5[%c112, %c0_22] : memref<512x128xf32, #tpu.memory_space<vmem>>, vector<8x128xf32>
      %45 = arith.addf %43, %44 : vector<8x128xf32>
      %c120 = arith.constant 120 : index
      %c0_23 = arith.constant 0 : index
      %46 = vector.load %arg5[%c120, %c0_23] : memref<512x128xf32, #tpu.memory_space<vmem>>, vector<8x128xf32>
      %47 = arith.addf %45, %46 : vector<8x128xf32>
      %c128 = arith.constant 128 : index
      %c0_24 = arith.constant 0 : index
      %48 = vector.load %arg5[%c128, %c0_24] : memref<512x128xf32, #tpu.memory_space<vmem>>, vector<8x128xf32>
      %49 = arith.addf %47, %48 : vector<8x128xf32>
      %c136 = arith.constant 136 : index
      %c0_25 = arith.constant 0 : index
      %50 = vector.load %arg5[%c136, %c0_25] : memref<512x128xf32, #tpu.memory_space<vmem>>, vector<8x128xf32>
      %51 = arith.addf %49, %50 : vector<8x128xf32>
      %c144 = arith.constant 144 : index
      %c0_26 = arith.constant 0 : index
      %52 = vector.load %arg5[%c144, %c0_26] : memref<512x128xf32, #tpu.memory_space<vmem>>, vector<8x128xf32>
      %53 = arith.addf %51, %52 : vector<8x128xf32>
      %c152 = arith.constant 152 : index
      %c0_27 = arith.constant 0 : index
      %54 = vector.load %arg5[%c152, %c0_27] : memref<512x128xf32, #tpu.memory_space<vmem>>, vector<8x128xf32>
      %55 = arith.addf %53, %54 : vector<8x128xf32>
      %c160 = arith.constant 160 : index
      %c0_28 = arith.constant 0 : index
      %56 = vector.load %arg5[%c160, %c0_28] : memref<512x128xf32, #tpu.memory_space<vmem>>, vector<8x128xf32>
      %57 = arith.addf %55, %56 : vector<8x128xf32>
      %c168 = arith.constant 168 : index
      %c0_29 = arith.constant 0 : index
      %58 = vector.load %arg5[%c168, %c0_29] : memref<512x128xf32, #tpu.memory_space<vmem>>, vector<8x128xf32>
      %59 = arith.addf %57, %58 : vector<8x128xf32>
      %c176 = arith.constant 176 : index
      %c0_30 = arith.constant 0 : index
      %60 = vector.load %arg5[%c176, %c0_30] : memref<512x128xf32, #tpu.memory_space<vmem>>, vector<8x128xf32>
      %61 = arith.addf %59, %60 : vector<8x128xf32>
      %c184 = arith.constant 184 : index
      %c0_31 = arith.constant 0 : index
      %62 = vector.load %arg5[%c184, %c0_31] : memref<512x128xf32, #tpu.memory_space<vmem>>, vector<8x128xf32>
      %63 = arith.addf %61, %62 : vector<8x128xf32>
      %c192 = arith.constant 192 : index
      %c0_32 = arith.constant 0 : index
      %64 = vector.load %arg5[%c192, %c0_32] : memref<512x128xf32, #tpu.memory_space<vmem>>, vector<8x128xf32>
      %65 = arith.addf %63, %64 : vector<8x128xf32>
      %c200 = arith.constant 200 : index
      %c0_33 = arith.constant 0 : index
      %66 = vector.load %arg5[%c200, %c0_33] : memref<512x128xf32, #tpu.memory_space<vmem>>, vector<8x128xf32>
      %67 = arith.addf %65, %66 : vector<8x128xf32>
      %c208 = arith.constant 208 : index
      %c0_34 = arith.constant 0 : index
      %68 = vector.load %arg5[%c208, %c0_34] : memref<512x128xf32, #tpu.memory_space<vmem>>, vector<8x128xf32>
      %69 = arith.addf %67, %68 : vector<8x128xf32>
      %c216 = arith.constant 216 : index
      %c0_35 = arith.constant 0 : index
      %70 = vector.load %arg5[%c216, %c0_35] : memref<512x128xf32, #tpu.memory_space<vmem>>, vector<8x128xf32>
      %71 = arith.addf %69, %70 : vector<8x128xf32>
      %c224 = arith.constant 224 : index
      %c0_36 = arith.constant 0 : index
      %72 = vector.load %arg5[%c224, %c0_36] : memref<512x128xf32, #tpu.memory_space<vmem>>, vector<8x128xf32>
      %73 = arith.addf %71, %72 : vector<8x128xf32>
      %c232 = arith.constant 232 : index
      %c0_37 = arith.constant 0 : index
      %74 = vector.load %arg5[%c232, %c0_37] : memref<512x128xf32, #tpu.memory_space<vmem>>, vector<8x128xf32>
      %75 = arith.addf %73, %74 : vector<8x128xf32>
      %c240 = arith.constant 240 : index
      %c0_38 = arith.constant 0 : index
      %76 = vector.load %arg5[%c240, %c0_38] : memref<512x128xf32, #tpu.memory_space<vmem>>, vector<8x128xf32>
      %77 = arith.addf %75, %76 : vector<8x128xf32>
      %c248 = arith.constant 248 : index
      %c0_39 = arith.constant 0 : index
      %78 = vector.load %arg5[%c248, %c0_39] : memref<512x128xf32, #tpu.memory_space<vmem>>, vector<8x128xf32>
      %79 = arith.addf %77, %78 : vector<8x128xf32>
      %c256 = arith.constant 256 : index
      %c0_40 = arith.constant 0 : index
      %80 = vector.load %arg5[%c256, %c0_40] : memref<512x128xf32, #tpu.memory_space<vmem>>, vector<8x128xf32>
      %81 = arith.addf %79, %80 : vector<8x128xf32>
      %c264 = arith.constant 264 : index
      %c0_41 = arith.constant 0 : index
      %82 = vector.load %arg5[%c264, %c0_41] : memref<512x128xf32, #tpu.memory_space<vmem>>, vector<8x128xf32>
      %83 = arith.addf %81, %82 : vector<8x128xf32>
      %c272 = arith.constant 272 : index
      %c0_42 = arith.constant 0 : index
      %84 = vector.load %arg5[%c272, %c0_42] : memref<512x128xf32, #tpu.memory_space<vmem>>, vector<8x128xf32>
      %85 = arith.addf %83, %84 : vector<8x128xf32>
      %c280 = arith.constant 280 : index
      %c0_43 = arith.constant 0 : index
      %86 = vector.load %arg5[%c280, %c0_43] : memref<512x128xf32, #tpu.memory_space<vmem>>, vector<8x128xf32>
      %87 = arith.addf %85, %86 : vector<8x128xf32>
      %c288 = arith.constant 288 : index
      %c0_44 = arith.constant 0 : index
      %88 = vector.load %arg5[%c288, %c0_44] : memref<512x128xf32, #tpu.memory_space<vmem>>, vector<8x128xf32>
      %89 = arith.addf %87, %88 : vector<8x128xf32>
      %c296 = arith.constant 296 : index
      %c0_45 = arith.constant 0 : index
      %90 = vector.load %arg5[%c296, %c0_45] : memref<512x128xf32, #tpu.memory_space<vmem>>, vector<8x128xf32>
      %91 = arith.addf %89, %90 : vector<8x128xf32>
      %c304 = arith.constant 304 : index
      %c0_46 = arith.constant 0 : index
      %92 = vector.load %arg5[%c304, %c0_46] : memref<512x128xf32, #tpu.memory_space<vmem>>, vector<8x128xf32>
      %93 = arith.addf %91, %92 : vector<8x128xf32>
      %c312 = arith.constant 312 : index
      %c0_47 = arith.constant 0 : index
      %94 = vector.load %arg5[%c312, %c0_47] : memref<512x128xf32, #tpu.memory_space<vmem>>, vector<8x128xf32>
      %95 = arith.addf %93, %94 : vector<8x128xf32>
      %c320 = arith.constant 320 : index
      %c0_48 = arith.constant 0 : index
      %96 = vector.load %arg5[%c320, %c0_48] : memref<512x128xf32, #tpu.memory_space<vmem>>, vector<8x128xf32>
      %97 = arith.addf %95, %96 : vector<8x128xf32>
      %c328 = arith.constant 328 : index
      %c0_49 = arith.constant 0 : index
      %98 = vector.load %arg5[%c328, %c0_49] : memref<512x128xf32, #tpu.memory_space<vmem>>, vector<8x128xf32>
      %99 = arith.addf %97, %98 : vector<8x128xf32>
      %c336 = arith.constant 336 : index
      %c0_50 = arith.constant 0 : index
      %100 = vector.load %arg5[%c336, %c0_50] : memref<512x128xf32, #tpu.memory_space<vmem>>, vector<8x128xf32>
      %101 = arith.addf %99, %100 : vector<8x128xf32>
      %c344 = arith.constant 344 : index
      %c0_51 = arith.constant 0 : index
      %102 = vector.load %arg5[%c344, %c0_51] : memref<512x128xf32, #tpu.memory_space<vmem>>, vector<8x128xf32>
      %103 = arith.addf %101, %102 : vector<8x128xf32>
      %c352 = arith.constant 352 : index
      %c0_52 = arith.constant 0 : index
      %104 = vector.load %arg5[%c352, %c0_52] : memref<512x128xf32, #tpu.memory_space<vmem>>, vector<8x128xf32>
      %105 = arith.addf %103, %104 : vector<8x128xf32>
      %c360 = arith.constant 360 : index
      %c0_53 = arith.constant 0 : index
      %106 = vector.load %arg5[%c360, %c0_53] : memref<512x128xf32, #tpu.memory_space<vmem>>, vector<8x128xf32>
      %107 = arith.addf %105, %106 : vector<8x128xf32>
      %c368 = arith.constant 368 : index
      %c0_54 = arith.constant 0 : index
      %108 = vector.load %arg5[%c368, %c0_54] : memref<512x128xf32, #tpu.memory_space<vmem>>, vector<8x128xf32>
      %109 = arith.addf %107, %108 : vector<8x128xf32>
      %c376 = arith.constant 376 : index
      %c0_55 = arith.constant 0 : index
      %110 = vector.load %arg5[%c376, %c0_55] : memref<512x128xf32, #tpu.memory_space<vmem>>, vector<8x128xf32>
      %111 = arith.addf %109, %110 : vector<8x128xf32>
      %c384 = arith.constant 384 : index
      %c0_56 = arith.constant 0 : index
      %112 = vector.load %arg5[%c384, %c0_56] : memref<512x128xf32, #tpu.memory_space<vmem>>, vector<8x128xf32>
      %113 = arith.addf %111, %112 : vector<8x128xf32>
      %c392 = arith.constant 392 : index
      %c0_57 = arith.constant 0 : index
      %114 = vector.load %arg5[%c392, %c0_57] : memref<512x128xf32, #tpu.memory_space<vmem>>, vector<8x128xf32>
      %115 = arith.addf %113, %114 : vector<8x128xf32>
      %c400 = arith.constant 400 : index
      %c0_58 = arith.constant 0 : index
      %116 = vector.load %arg5[%c400, %c0_58] : memref<512x128xf32, #tpu.memory_space<vmem>>, vector<8x128xf32>
      %117 = arith.addf %115, %116 : vector<8x128xf32>
      %c408 = arith.constant 408 : index
      %c0_59 = arith.constant 0 : index
      %118 = vector.load %arg5[%c408, %c0_59] : memref<512x128xf32, #tpu.memory_space<vmem>>, vector<8x128xf32>
      %119 = arith.addf %117, %118 : vector<8x128xf32>
      %c416 = arith.constant 416 : index
      %c0_60 = arith.constant 0 : index
      %120 = vector.load %arg5[%c416, %c0_60] : memref<512x128xf32, #tpu.memory_space<vmem>>, vector<8x128xf32>
      %121 = arith.addf %119, %120 : vector<8x128xf32>
      %c424 = arith.constant 424 : index
      %c0_61 = arith.constant 0 : index
      %122 = vector.load %arg5[%c424, %c0_61] : memref<512x128xf32, #tpu.memory_space<vmem>>, vector<8x128xf32>
      %123 = arith.addf %121, %122 : vector<8x128xf32>
      %c432 = arith.constant 432 : index
      %c0_62 = arith.constant 0 : index
      %124 = vector.load %arg5[%c432, %c0_62] : memref<512x128xf32, #tpu.memory_space<vmem>>, vector<8x128xf32>
      %125 = arith.addf %123, %124 : vector<8x128xf32>
      %c440 = arith.constant 440 : index
      %c0_63 = arith.constant 0 : index
      %126 = vector.load %arg5[%c440, %c0_63] : memref<512x128xf32, #tpu.memory_space<vmem>>, vector<8x128xf32>
      %127 = arith.addf %125, %126 : vector<8x128xf32>
      %c448 = arith.constant 448 : index
      %c0_64 = arith.constant 0 : index
      %128 = vector.load %arg5[%c448, %c0_64] : memref<512x128xf32, #tpu.memory_space<vmem>>, vector<8x128xf32>
      %129 = arith.addf %127, %128 : vector<8x128xf32>
      %c456 = arith.constant 456 : index
      %c0_65 = arith.constant 0 : index
      %130 = vector.load %arg5[%c456, %c0_65] : memref<512x128xf32, #tpu.memory_space<vmem>>, vector<8x128xf32>
      %131 = arith.addf %129, %130 : vector<8x128xf32>
      %c464 = arith.constant 464 : index
      %c0_66 = arith.constant 0 : index
      %132 = vector.load %arg5[%c464, %c0_66] : memref<512x128xf32, #tpu.memory_space<vmem>>, vector<8x128xf32>
      %133 = arith.addf %131, %132 : vector<8x128xf32>
      %c472 = arith.constant 472 : index
      %c0_67 = arith.constant 0 : index
      %134 = vector.load %arg5[%c472, %c0_67] : memref<512x128xf32, #tpu.memory_space<vmem>>, vector<8x128xf32>
      %135 = arith.addf %133, %134 : vector<8x128xf32>
      %c480 = arith.constant 480 : index
      %c0_68 = arith.constant 0 : index
      %136 = vector.load %arg5[%c480, %c0_68] : memref<512x128xf32, #tpu.memory_space<vmem>>, vector<8x128xf32>
      %137 = arith.addf %135, %136 : vector<8x128xf32>
      %c488 = arith.constant 488 : index
      %c0_69 = arith.constant 0 : index
      %138 = vector.load %arg5[%c488, %c0_69] : memref<512x128xf32, #tpu.memory_space<vmem>>, vector<8x128xf32>
      %139 = arith.addf %137, %138 : vector<8x128xf32>
      %c496 = arith.constant 496 : index
      %c0_70 = arith.constant 0 : index
      %140 = vector.load %arg5[%c496, %c0_70] : memref<512x128xf32, #tpu.memory_space<vmem>>, vector<8x128xf32>
      %141 = arith.addf %139, %140 : vector<8x128xf32>
      %c504 = arith.constant 504 : index
      %c0_71 = arith.constant 0 : index
      %142 = vector.load %arg5[%c504, %c0_71] : memref<512x128xf32, #tpu.memory_space<vmem>>, vector<8x128xf32>
      %143 = arith.addf %141, %142 : vector<8x128xf32>
      %c0_72 = arith.constant 0 : index
      %c0_73 = arith.constant 0 : index
      %144 = vector.load %arg4[%c0_72, %c0_73] : memref<8x128xf32, #tpu.memory_space<vmem>>, vector<8x128xf32>
      tpu.vector_store %arg4[%c0_72, %c0_73], %143 {strides = array<i32>} : memref<8x128xf32, #tpu.memory_space<vmem>>, vector<8x128xf32>,
    } else {
    }
    return
  }
  func.func @transform_0(%arg0: i32, %arg1: i32) -> (i32, i32) {
    %c1_i32 = arith.constant 1 : i32
    %0 = arith.muli %arg0, %c1_i32 : i32
    %1 = arith.addi %0, %arg1 : i32
    %c0_i32 = arith.constant 0 : i32
    %2 = arith.minsi %1, %c0_i32 : i32
    %c0_i32_0 = arith.constant 0 : i32
    %c0_i32_1 = arith.constant 0 : i32
    return %2, %c0_i32_0 : i32, i32
  }
  func.func @transform_1(%arg0: i32, %arg1: i32) -> (i32, i32) {
    %c1_i32 = arith.constant 1 : i32
    %0 = arith.muli %arg0, %c1_i32 : i32
    %1 = arith.addi %0, %arg1 : i32
    %c0_i32 = arith.constant 0 : i32
    %2 = arith.minsi %1, %c0_i32 : i32
    %c0_i32_0 = arith.constant 0 : i32
    %c0_i32_1 = arith.constant 0 : i32
    return %2, %c0_i32_0 : i32, i32
  }
  func.func @transform_2(%arg0: i32, %arg1: i32) -> (i32, i32) {
    %c0_i32 = arith.constant 0 : i32
    %c0_i32_0 = arith.constant 0 : i32
    return %arg0, %c0_i32 : i32, i32
  }
}

</mosaic_0001>

<bundles_post_ra>
// kernel: tpu_custom_call.1
= control target key start
LH: loop header
LB: loop body
LE: loop exit
PB: predicated region body
PF: predicated region fallthrough
CT: control target
= control target key end

     0   :  { %7 = vsyncpa [#allocation4], 0  ;;  %s1590_s0 = inlined_call_operand.hbm [shape: f32[48,128], index: 0, kind: input, shape index: {}]   ;;  %s1591_s1 = inlined_call_operand.hbm [shape: f32[48,128], index: 1, kind: input, shape index: {}]   ;;  %s1592_s2 = inlined_call_operand.hbm [shape: f32[8,128], index: 2, kind: output, shape index: {}]  }
   0x1   :  { %8 = vsyncpa [#allocation7], 0 }
   0x2   :  { %9 = vsyncpa [#allocation5], 0 }
   0x3   :  { %20 = vsyncadd [#allocation4], 7424  ;;  %s1534_s9 = smov [#allocation3]   ;;  %s1462_s13 = scalar_lea.hbm %s1590_s0, 768 }
   0x4   :  { %s25_s10 = sshll.u32 %s1534_s9, 4  ;;  %p1463_p0 = scmp.ne.s32.totalorder %s1590_s0, %s1462_s13  ;;  %s26_s10 = int_to_ptr.vmem [resolvable:$true] %s25_s10 }
   0x5   :  { %p1466_p1 = scmp.lt.u32.totalorder %s1462_s13, %s1590_s0 }
   0x7   :  { %p1468_p2 = pnand %p1466_p1, %p1463_p0 }
   0x9   :  { %1471 = shalt.err (!%p1468_p2)
}
   0xa   :  { %s1472_s18 = scalar_lea.vmem %s26_s10, 768  ;;  %s1476_s19 = scalar_lea.vmem %s26_s10, 8192 }
   0xb   :  { %p1473_p3 = scmp.ne.s32.totalorder %s26_s10, %s1472_s18  ;;  %p1477_p4 = scmp.lt.s32.totalorder %s26_s10, %s26_s10 }
   0xc   :  { %p1478_p5 = scmp.lt.s32.totalorder %s1476_s19, %s1472_s18 }
   0xe   :  { %p1479_p6 = por %p1478_p5, %p1477_p4 }
  0x10   :  { %p1480_p7 = pnand %p1479_p6, %p1473_p3 }
  0x12   :  { %1483 = shalt.err (!%p1480_p7)
}
  0x13   :  { %s1535_s20 = smov 128   ;;  %s1536_s21 = smov 8  }
  0x14   :  { %31 = dma.hbm_to_vmem [thread:$0]  %s1590_s0, 768, %s26_s10, [#allocation4], %s1535_s20, %s1535_s20, %s1536_s21  }
  0x15   :  { %42 = vsyncadd [#allocation7], 7424  ;;  %s1537_s24 = smov [#allocation6]   ;;  %s1484_s28 = scalar_lea.hbm %s1591_s1, 768 }
  0x16   :  { %s47_s25 = sshll.u32 %s1537_s24, 4  ;;  %p1485_p8 = scmp.ne.s32.totalorder %s1591_s1, %s1484_s28  ;;  %s48_s25 = int_to_ptr.vmem [resolvable:$true] %s47_s25 }
  0x17   :  { %p1488_p9 = scmp.lt.u32.totalorder %s1484_s28, %s1591_s1 }
  0x19   :  { %p1490_p10 = pnand %p1488_p9, %p1485_p8 }
  0x1b   :  { %1493 = shalt.err (!%p1490_p10)
}
  0x1c   :  { %s1494_s5 = scalar_lea.vmem %s48_s25, 768  ;;  %s1498_s0 = scalar_lea.vmem %s48_s25, 8192 }
  0x1d   :  { %p1495_p11 = scmp.ne.s32.totalorder %s48_s25, %s1494_s5  ;;  %p1499_p12 = scmp.lt.s32.totalorder %s48_s25, %s48_s25 }
  0x1e   :  { %p1500_p13 = scmp.lt.s32.totalorder %s1498_s0, %s1494_s5 }
  0x20   :  { %p1501_p0 = por %p1500_p13, %p1499_p12 }
  0x22   :  { %p1502_p1 = pnand %p1501_p0, %p1495_p11 }
  0x24   :  { %1505 = shalt.err (!%p1502_p1)
}
  0x25   :  { %53 = dma.hbm_to_vmem [thread:$0]  %s1591_s1, 768, %s48_s25, [#allocation7], %s1535_s20, %s1535_s20, %s1536_s21  }
  0x26   :  { %1528 = dma.done.wait [#allocation4], 8192  }
  0x27   :  { %1529 = vsyncadd [#allocation4], 4294959104 }
  0x28   :  { %1530 = dma.done.wait [#allocation7], 8192  }
  0x29   :  { %1531 = vsyncadd [#allocation7], 4294959104  ;;  %v599_v0 = vld [vmem:[#allocation3] sm:$0xff]  ;;  %v600_v1 = vld [vmem:[#allocation3 + $0x8] sm:$0xff]  ;;  %s1538_s1 = smov [#allocation8]  }
  0x2a   :  { %v601_v2 = vld [vmem:[#allocation3 + $0x10] sm:$0xff]  ;;  %v602_v3 = vld [vmem:[#allocation3 + $0x18] sm:$0xff]  ;;  %v603_v4 = vld [vmem:[#allocation3 + $0x20] sm:$0xff]  ;;  %s1443_s8 = sshll.u32 %s1538_s1, 4  ;;  %s1444_s8 = int_to_ptr.vmem [resolvable:$true] %s1443_s8 }
  0x2b   :  { %v663_v5 = vld [vmem:[#allocation6] sm:$0xff]  ;;  %v664_v6 = vld [vmem:[#allocation6 + $0x8] sm:$0xff]  ;;  %v665_v7 = vld [vmem:[#allocation6 + $0x10] sm:$0xff]  ;;  %s1506_s9 = scalar_lea.vmem %s1444_s8, 128  ;;  %p1511_p3 = scmp.lt.s32.totalorder %s1444_s8, %s1444_s8 }
  0x2c   :  { %v666_v8 = vld [vmem:[#allocation6 + $0x18] sm:$0xff]  ;;  %v667_v9 = vld [vmem:[#allocation6 + $0x20] sm:$0xff]  ;;  %v727_v10 = vsub.f32 %v599_v0, %v663_v5  ;;  %v728_v11 = vsub.f32 %v600_v1, %v664_v6  ;;  %v729_v12 = vsub.f32 %v601_v2, %v665_v7  ;;  %v604_v13 = vld [vmem:[#allocation3 + $0x28] sm:$0xff]  ;;  %p1507_p2 = scmp.ne.s32.totalorder %s1444_s8, %s1506_s9  ;;  %p1512_p4 = scmp.lt.s32.totalorder %s1506_s9, %s1506_s9 }
  0x2d   :  { %v668_v14 = vld [vmem:[#allocation6 + $0x28] sm:$0xff]  ;;  %v730_v15 = vsub.f32 %v602_v3, %v666_v8  ;;  %v731_v16 = vsub.f32 %v603_v4, %v667_v9 }
  0x2e   :  { %v791_v17 = vmul.f32 %v727_v10, %v727_v10  ;;  %v792_v18 = vmul.f32 %v728_v11, %v728_v11  ;;  %v793_v19 = vmul.f32 %v729_v12, %v729_v12  ;;  %v732_v20 = vsub.f32 %v604_v13, %v668_v14  ;;  %p1513_p5 = por %p1512_p4, %p1511_p3 }
  0x2f   :  { %v794_v21 = vmul.f32 %v730_v15, %v730_v15  ;;  %v795_v23 = vmul.f32 %v731_v16, %v731_v16 }
  0x30   :  { %v1311_v22 = vadd.f32 %v792_v18, %v791_v17  ;;  %v796_v25 = vmul.f32 %v732_v20, %v732_v20  ;;  %p1514_p6 = pnand %p1513_p5, %p1507_p2 }
  0x32   :  { %v1313_v24 = vadd.f32 %v1311_v22, %v793_v19 }
  0x34   :  { %v1315_v26 = vadd.f32 %v1313_v24, %v794_v21 }
  0x36   :  { %v1317_v27 = vadd.f32 %v1315_v26, %v795_v23 }
  0x38   :  { %v1319_v28 = vadd.f32 %v1317_v27, %v796_v25 }
  0x3a   :  { %1436 = vst [vmem:[#allocation8] sm:$0xff] %v1319_v28 }
  0x3b   :  { %1517 = shalt.err (!%p1514_p6)
}
  0x3c   :  { %s1518_s12 = scalar_lea.hbm %s1592_s2, 128 }
  0x3d   :  { %p1519_p7 = scmp.ne.s32.totalorder %s1592_s2, %s1518_s12  ;;  %p1522_p8 = scmp.lt.u32.totalorder %s1518_s12, %s1592_s2 }
  0x3f   :  { %p1524_p9 = pnand %p1522_p8, %p1519_p7 }
  0x41   :  { %1527 = shalt.err (!%p1524_p9)
}
  0x42   :  { %1446 = dma.vmem_to_hbm [thread:$0]  %s1444_s8, 128, %s1592_s2, [#allocation5]  }
  0x43   :  { %1532 = dma.done.wait [#allocation5], 128  }
  0x44   :  { %1533 = vsyncadd [#allocation5], 4294967168 }
  0x45   :  { %1450 = vsyncpa [#allocation4], 1 }
  0x46   :  { %1451 = vsyncpa [#allocation7], 1 }
  0x47   :  { %1452 = vsyncpa [#allocation5], 1 }

</bundles_post_ra>
